<compile_context>
chip_gen: v7x
topology: tpu7x:2x2x1
jax: 0.10.0
libtpu: 0.0.40
codegen_flags: <defaults>
</compile_context>

<pallas_src>
import functools

import jax
import jax.numpy as jnp
from jax import lax
from jax.experimental import pallas as pl
from jax.experimental.pallas import tpu as pltpu


# -----------------------------------------------------------------------------
# One-time pltpu.roll direction probe (+1 == jnp.roll convention: positive shift
# moves elements toward higher indices).  Makes the 3x3-conv tap shifts correct
# regardless of the rotate convention of the installed Pallas/Mosaic version.
# -----------------------------------------------------------------------------
_ROLL_SIGN = None


def _probe_roll_kernel(x_ref, o_ref):
    o_ref[...] = pltpu.roll(x_ref[...], 1, axis=1)


def _roll_sign():
    global _ROLL_SIGN
    if _ROLL_SIGN is None:
        x = jnp.broadcast_to(lax.iota(jnp.float32, 128), (8, 128))
        y = pl.pallas_call(
            _probe_roll_kernel,
            out_shape=jax.ShapeDtypeStruct((8, 128), jnp.float32),
        )(x)
        _ROLL_SIGN = 1 if float(y[0, 1]) == 0.0 else -1
    return _ROLL_SIGN


# -----------------------------------------------------------------------------
# Kernel: one batch element per grid step, everything in (channels, H*W) layout.
# -----------------------------------------------------------------------------
def resblock_kernel(x_ref, w1_ref, b1_ref, w2_ref, b2_ref, w3_ref, b3_ref, o_ref,
                    *, H, W, roll_sign):
    HW = H * W
    x = x_ref[0]                                            # (Cin, HW), bf16

    # ---- conv1 (1x1, BN1 scale folded) + bias + ReLU ----
    h1 = jnp.dot(w1_ref[...], x, preferred_element_type=jnp.float32)   # (d1, HW) f32
    h1 = jnp.maximum(h1 + b1_ref[...], 0.0)

    # ---- conv2 (3x3, pad=1, BN2 scale folded) + bias + ReLU ----
    # Each tap (dh, dw) is a lane roll of the flattened image with the invalid
    # (out-of-image / row-wrap) positions masked to zero.  All 9 taps are stacked
    # along K so the whole 3x3 conv is a single MXU dot.
    pos = lax.broadcasted_iota(jnp.int32, (1, HW), 1)
    row = pos // W
    col = pos % W
    # Boundary predicates, computed once and shared by all taps.
    row_mask = {-1: row >= 1, 0: None, 1: row < H - 1}
    col_mask = {-1: col >= 1, 0: None, 1: col < W - 1}

    taps = []
    for dh in (-1, 0, 1):
        for dw in (-1, 0, 1):
            d = dh * W + dw
            t = h1 if d == 0 else pltpu.roll(h1, (roll_sign * -d) % HW, axis=1)
            m = row_mask[dh]
            if col_mask[dw] is not None:
                m = col_mask[dw] if m is None else (m & col_mask[dw])
            if m is not None:
                t = jnp.where(m, t, 0.0)
            taps.append(t.astype(jnp.bfloat16))             # stack directly in bf16
    stacked = jnp.concatenate(taps, axis=0)                 # (9*d1, HW) bf16
    h2 = jnp.dot(w2_ref[...], stacked, preferred_element_type=jnp.float32)
    h2 = jnp.maximum(h2 + b2_ref[...], 0.0)                 # (d1, HW) f32

    # ---- conv3 (1x1, BN3 scale folded) + bias + residual + ReLU ----
    h3 = jnp.dot(w3_ref[...], h2.astype(jnp.bfloat16),
                 preferred_element_type=jnp.float32)        # (d2, HW) f32
    out = jnp.maximum(h3 + b3_ref[...] + x.astype(jnp.float32), 0.0)
    o_ref[0] = out.astype(o_ref.dtype)


# -----------------------------------------------------------------------------
# Wrapper.  x: (N, Cin, H, W) NCHW.  Weights are pre-folded (BN scale absorbed):
#   w1f: (d1, Cin) bf16, w2f: (d1, 9*d1) bf16 (tap-major kh*3+kw), w3f: (d2, d1) bf16
#   b1/b2/b3: (d, 1) f32 per-channel biases.
# -----------------------------------------------------------------------------
def residual_block(x, w1f, b1, w2f, b2, w3f, b3):
    N, Cin, H, W = x.shape
    d1 = w1f.shape[0]
    d2 = w3f.shape[0]
    HW = H * W
    assert d2 == Cin, "residual add requires d2 == in_channels"
    assert w2f.shape == (d1, 9 * d1)

    x_flat = x.reshape(N, Cin, HW)                          # H*W becomes the lane axis
    kernel = functools.partial(resblock_kernel, H=H, W=W, roll_sign=_roll_sign())

    def full(arr):
        return pl.BlockSpec(arr.shape, lambda b: (0,) * arr.ndim)

    out = pl.pallas_call(
        kernel,
        out_shape=jax.ShapeDtypeStruct((N, d2, HW), x.dtype),
        grid_spec=pltpu.PrefetchScalarGridSpec(
            num_scalar_prefetch=0,
            grid=(N,),
            in_specs=[
                pl.BlockSpec((1, Cin, HW), lambda b: (b, 0, 0)),
                full(w1f), full(b1), full(w2f), full(b2), full(w3f), full(b3),
            ],
            out_specs=pl.BlockSpec((1, d2, HW), lambda b: (b, 0, 0)),
        ),
        compiler_params=pltpu.CompilerParams(
            dimension_semantics=("parallel",)),
    )(x_flat, w1f, b1, w2f, b2, w3f, b3)
    return out.reshape(N, d2, H, W)


# -----------------------------------------------------------------------------
# Host-side param prep: fold inference BN into conv weights, cast to bf16,
# re-layout the 3x3 weight as a (d1, 9*d1) K-stacked matrix (tap-major kh*3+kw).
# PyTorch layouts: w1 (d1,Cin,1,1), w2 (d1,d1,3,3), w3 (d2,d1,1,1); bn = (g,b,mean,var).
# -----------------------------------------------------------------------------
def fold_params(w1, w2, w3, bn1, bn2, bn3, eps=1e-5, compute_dtype=jnp.bfloat16):
    def fold(gamma, beta, mean, var):
        s = gamma / jnp.sqrt(var + eps)
        return s, beta - mean * s

    s1, c1 = fold(*bn1)
    s2, c2 = fold(*bn2)
    s3, c3 = fold(*bn3)
    d1 = w1.shape[0]
    w1f = (s1[:, None] * w1[:, :, 0, 0]).astype(compute_dtype)               # (d1, Cin)
    w2m = jnp.transpose(w2, (0, 2, 3, 1)).reshape(d1, 9 * d1)                # (o, (kh*3+kw)*d1+i)
    w2f = (s2[:, None] * w2m).astype(compute_dtype)                          # (d1, 9*d1)
    w3f = (s3[:, None] * w3[:, :, 0, 0]).astype(compute_dtype)               # (d2, d1)
    return (w1f, c1[:, None].astype(jnp.float32),
            w2f, c2[:, None].astype(jnp.float32),
            w3f, c3[:, None].astype(jnp.float32))


# -------------------------- pure-JAX reference (NCHW, f32) --------------------------
def reference(x, w1, w2, w3, bn1, bn2, bn3, eps=1e-5):
    dn = ("NCHW", "OIHW", "NCHW")

    def bn(h, p):
        gamma, beta, mean, var = p
        s = gamma / jnp.sqrt(var + eps)
        return h * s.reshape(1, -1, 1, 1) + (beta - mean * s).reshape(1, -1, 1, 1)

    h = lax.conv_general_dilated(x, w1, (1, 1), "VALID", dimension_numbers=dn)
    h = jnp.maximum(bn(h, bn1), 0.0)
    h = lax.conv_general_dilated(h, w2, (1, 1), ((1, 1), (1, 1)), dimension_numbers=dn)
    h = jnp.maximum(bn(h, bn2), 0.0)
    h = lax.conv_general_dilated(h, w3, (1, 1), "VALID", dimension_numbers=dn)
    h = bn(h, bn3)
    return jnp.maximum(h + x, 0.0)


if __name__ == "__main__":
    N, H, W = 2, 16, 16
    in_channels, d1, d2 = 4, 8, 4            # d2 == in_channels (residual add)

    key = jax.random.PRNGKey(0)
    ks = jax.random.split(key, 16)

    x = jax.random.normal(ks[0], (N, in_channels, H, W), jnp.float32)
    w1 = jax.random.normal(ks[1], (d1, in_channels, 1, 1), jnp.float32) * 0.2
    w2 = jax.random.normal(ks[2], (d1, d1, 3, 3), jnp.float32) * 0.1
    w3 = jax.random.normal(ks[3], (d2, d1, 1, 1), jnp.float32) * 0.2

    def mk_bn(k0, k1, k2, k3, ch):
        return (jax.random.uniform(k0, (ch,), minval=0.5, maxval=1.5),
                jax.random.normal(k1, (ch,)) * 0.1,
                jax.random.normal(k2, (ch,)) * 0.1,
                jax.random.uniform(k3, (ch,), minval=0.5, maxval=1.5))

    bn1 = mk_bn(ks[4], ks[5], ks[6], ks[7], d1)
    bn2 = mk_bn(ks[8], ks[9], ks[10], ks[11], d1)
    bn3 = mk_bn(ks[12], ks[13], ks[14], ks[15], d2)

    params = fold_params(w1, w2, w3, bn1, bn2, bn3)
    x_b = x.astype(jnp.bfloat16)             # halve HBM traffic; MXU is bf16-native

    out = residual_block(x_b, *params)
    out = jax.block_until_ready(out)

    # Reference sees the same (bf16-rounded) input; weights stay f32, so the tolerance
    # covers the intentional bf16 MXU-operand rounding inside the kernel.
    ref = reference(x_b.astype(jnp.float32), w1, w2, w3, bn1, bn2, bn3)
    assert out.shape == (N, d2, H, W)
    out_f32 = out.astype(jnp.float32)
    max_err = float(jnp.max(jnp.abs(out_f32 - ref)))
    assert jnp.allclose(out_f32, ref, atol=5e-2, rtol=5e-2), (
        f"mismatch vs reference (max abs err {max_err})")

    print("KERNEL_OK")
</pallas_src>

<mosaic_0001>
module attributes {stable_mosaic.version = 11 : i64} {
  func.func @_probe_roll_kernel(%arg0: memref<8x128xf32, #tpu.memory_space<vmem>>, %arg1: memref<8x128xf32, #tpu.memory_space<vmem>>) attributes {dimension_semantics = [], scalar_prefetch = 0 : i64, scratch_operands = 0 : i64, tpu.core_type = #tpu.core_type<tc>} {
    %c0 = arith.constant 0 : index
    %c0_0 = arith.constant 0 : index
    %0 = vector.load %arg0[%c0, %c0_0] : memref<8x128xf32, #tpu.memory_space<vmem>>, vector<8x128xf32>
    %c1_i32 = arith.constant 1 : i32
    %1 = tpu.dynamic_rotate %0 by %c1_i32 dim 1 : vector<8x128xf32>, i32 -> vector<8x128xf32>
    %c0_1 = arith.constant 0 : index
    %c0_2 = arith.constant 0 : index
    %2 = vector.load %arg1[%c0_1, %c0_2] : memref<8x128xf32, #tpu.memory_space<vmem>>, vector<8x128xf32>
    tpu.vector_store %arg1[%c0_1, %c0_2], %1 {strides = array<i32>} : memref<8x128xf32, #tpu.memory_space<vmem>>, vector<8x128xf32>,
    return
  }
}

</mosaic_0001>

<bundles_post_ra>
// kernel: tpu_custom_call.1
= control target key start
LH: loop header
LB: loop body
LE: loop exit
PB: predicated region body
PF: predicated region fallthrough
CT: control target
= control target key end

     0   :  { %6 = vsyncpa [#allocation3], 0  ;;  %s128_s0 = inlined_call_operand.hbm [shape: f32[8,128], index: 0, kind: input, shape index: {}]   ;;  %s129_s1 = inlined_call_operand.hbm [shape: f32[8,128], index: 1, kind: output, shape index: {}]  }
   0x1   :  { %7 = vsyncpa [#allocation4], 0  ;;  %s91_s6 = smov [#allocation2]   ;;  %s43_s10 = scalar_lea.hbm %s128_s0, 128 }
   0x2   :  { %s14_s7 = sshll.u32 %s91_s6, 4  ;;  %p44_p0 = scmp.ne.s32.totalorder %s128_s0, %s43_s10  ;;  %s15_s7 = int_to_ptr.vmem [resolvable:$true] %s14_s7 }
   0x3   :  { %p47_p1 = scmp.lt.u32.totalorder %s43_s10, %s128_s0 }
   0x5   :  { %p49_p2 = pnand %p47_p1, %p44_p0 }
   0x7   :  { %52 = shalt.err (!%p49_p2)
}
   0x8   :  { %s53_s15 = scalar_lea.vmem %s15_s7, 128  ;;  %p58_p4 = scmp.lt.s32.totalorder %s15_s7, %s15_s7 }
   0x9   :  { %p54_p3 = scmp.ne.s32.totalorder %s15_s7, %s53_s15  ;;  %p59_p5 = scmp.lt.s32.totalorder %s53_s15, %s53_s15 }
   0xb   :  { %p60_p6 = por %p59_p5, %p58_p4 }
   0xd   :  { %p61_p7 = pnand %p60_p6, %p54_p3 }
   0xf   :  { %64 = shalt.err (!%p61_p7)
}
  0x10   :  { %17 = dma.hbm_to_vmem [thread:$0]  %s128_s0, 128, %s15_s7, [#allocation3]  }
  0x11   :  { %87 = dma.done.wait [#allocation3], 128  }
  0x12   :  { %88 = vsyncadd [#allocation3], 4294967168  ;;  %v21_v0 = vld [vmem:[#allocation2] sm:$0xff]  ;;  %s92_s18 = smov 1   ;;  %s93_s19 = smov [#allocation5]  }
  0x13   :  { %22 = vrot.lane.b32.xlu0 %v21_v0, %s92_s18  ;;  %s31_s20 = sshll.u32 %s93_s19, 4  ;;  %s32_s20 = int_to_ptr.vmem [resolvable:$true] %s31_s20 }
  0x14   :  { %s65_s21 = scalar_lea.vmem %s32_s20, 128  ;;  %p70_p9 = scmp.lt.s32.totalorder %s32_s20, %s32_s20 }
  0x15   :  { %p66_p8 = scmp.ne.s32.totalorder %s32_s20, %s65_s21  ;;  %p71_p10 = scmp.lt.s32.totalorder %s65_s21, %s65_s21 }
  0x17   :  { %p72_p11 = por %p71_p10, %p70_p9 }
  0x19   :  { %p73_p12 = pnand %p72_p11, %p66_p8 }
  0x85   :  { %v23_v1 = vpop.permute.xlu0 %22 }
  0x86   :  { %24 = vst [vmem:[#allocation5] sm:$0xff] %v23_v1 }
  0x87   :  { %76 = shalt.err (!%p73_p12)
}
  0x88   :  { %s77_s0 = scalar_lea.hbm %s129_s1, 128 }
  0x89   :  { %p78_p13 = scmp.ne.s32.totalorder %s129_s1, %s77_s0  ;;  %p81_p0 = scmp.lt.u32.totalorder %s77_s0, %s129_s1 }
  0x8b   :  { %p83_p1 = pnand %p81_p0, %p78_p13 }
  0x8d   :  { %86 = shalt.err (!%p83_p1)
}
  0x8e   :  { %34 = dma.vmem_to_hbm [thread:$0]  %s32_s20, 128, %s129_s1, [#allocation4]  }
  0x8f   :  { %89 = dma.done.wait [#allocation4], 128  }
  0x90   :  { %90 = vsyncadd [#allocation4], 4294967168 }
  0x91   :  { %38 = vsyncpa [#allocation3], 1 }
  0x92   :  { %39 = vsyncpa [#allocation4], 1 }

</bundles_post_ra>
